<compile_context>
chip_gen: v7x
topology: tpu7x:2x2x1
jax: 0.10.0
libtpu: 0.0.40
codegen_flags: <defaults>
</compile_context>

<pallas_src>
import functools

import jax
import jax.numpy as jnp
from jax import lax
from jax.experimental import pallas as pl
from jax.experimental.pallas import tpu as pltpu


# ------------------------------------------------------------------ helpers --
def _round_up(x, m):
    return (x + m - 1) // m * m


def _choose_t_chunk(T, Bp, Hp, budget_bytes=8 << 20):
    """Largest T-chunk (preferring multiples of 8) that divides T and keeps
    kernel-1's VMEM footprint (double-buffered in/out + chunk scratch) in budget."""
    per_t = Bp * Hp * (2 * 4 + 2 * 4 + 4)      # xw in (2x f32) + hs out (2x) + scratch
    cap = max(1, min(T, budget_bytes // per_t))
    best = 1
    for c in range(1, cap + 1):                # largest divisor of T <= cap
        if T % c == 0:
            best = c
    for c in range(8, cap + 1, 8):             # prefer multiple-of-8 divisors
        if T % c == 0:
            best = c
    return best


def _choose_v_tile(Vp, Hp, T, Bp, itemsize, budget_bytes=12 << 20):
    """Largest vocab tile (multiple of 128, divides Vp, <= 2048) fitting the
    kernel-2 VMEM budget (double-buffered weight + output tiles, resident hs)."""
    hs_bytes = 2 * T * Bp * Hp * itemsize

    def fits(tv):
        wout = 2 * tv * Hp * itemsize
        out = 2 * T * Bp * tv * 4
        return hs_bytes + wout + out <= budget_bytes

    tv = min(Vp, 2048)
    while tv > 128 and (Vp % tv != 0 or not fits(tv)):
        tv -= 128
    return tv


# ---------------------------------------------------------------- kernel 1 ---
def rnn_recurrence_kernel(xw_ref, whh_ref, hs_ref, h_scr, chunk_scr):
    """One T-chunk of the tanh recurrence.

    xw_ref   : (TC, Bp, Hp) f32  -- x_t @ W_ih + b_ih + b_hh, time-major.
    whh_ref  : (Hp, Hp)     f32
    hs_ref   : (TC, Bp, Hp)      -- hidden-state output chunk (f32 or bf16).
    h_scr    : (Bp, Hp)     f32  -- carry across grid iterations (chunks).
    chunk_scr: (TC, Bp, Hp) f32  -- per-step f32 stores; bulk-cast at the end.
    """
    @pl.when(pl.program_id(0) == 0)
    def _init():
        h_scr[...] = jnp.zeros_like(h_scr)

    whh = whh_ref[...]                         # hoisted: reused every step
    tc = xw_ref.shape[0]

    def step(t, h):                            # h: (Bp, Hp) -- the only loop carry
        h_new = jnp.tanh(
            xw_ref[t]                          # dense (Bp, Hp) VMEM load
            + jnp.dot(h, whh, preferred_element_type=jnp.float32))
        chunk_scr[t] = h_new                   # f32 store, off the serial chain
        return h_new

    # partial unroll so loads/stores overlap the serial dot->add->tanh chain
    h_scr[...] = lax.fori_loop(0, tc, step, h_scr[...], unroll=min(tc, 8))

    # single bulk (optionally down-casting) store of the whole chunk
    hs_ref[...] = chunk_scr[...].astype(hs_ref.dtype)


# ---------------------------------------------------------------- kernel 2 ---
def output_projection_kernel(hs_ref, wout_ref, bout_ref, out_ref):
    """Lane-dense Linear layer.

    hs_ref  : (T, Bp, Hp)  -- hidden states (bf16 or f32), time-major.
    wout_ref: (tv, Hp)     -- vocab tile of W_out.
    bout_ref: (1, tv) f32  -- lane-dense bias tile.
    out_ref : (T, Bp, tv) f32 -- logits with the vocab tile on the lane axis.
    """
    logits = lax.dot_general(
        hs_ref[...], wout_ref[...],
        dimension_numbers=(((2,), (1,)), ((), ())),   # contract over Hp
        preferred_element_type=jnp.float32)           # (T, Bp, tv), f32 accumulate
    out_ref[...] = logits + bout_ref[...][None]       # (1, 1, tv) broadcast


# ------------------------------------------------------------------ params ---
def init_params(key, emb_size, hidden_size, output_size, pad_index=0):
    """Mimics the PyTorch module: x @ w_ih, h @ w_hh, nn.Linear-style w_out (V, H)."""
    ks = jax.random.split(key, 7)
    emb_table = jax.random.normal(ks[0], (output_size, emb_size), jnp.float32)
    emb_table = emb_table.at[pad_index].set(0.0)       # padding_idx row zeroed

    k = 1.0 / jnp.sqrt(hidden_size)
    w_ih = jax.random.uniform(ks[1], (emb_size, hidden_size), jnp.float32, -k, k)
    w_hh = jax.random.uniform(ks[2], (hidden_size, hidden_size), jnp.float32, -k, k)
    b_ih = jax.random.uniform(ks[3], (hidden_size,), jnp.float32, -k, k)
    b_hh = jax.random.uniform(ks[4], (hidden_size,), jnp.float32, -k, k)
    w_out = jax.random.uniform(ks[5], (output_size, hidden_size), jnp.float32, -k, k)
    b_out = jax.random.uniform(ks[6], (output_size,), jnp.float32, -k, k)

    return dict(emb_table=emb_table, w_ih=w_ih, w_hh=w_hh,
                b_ih=b_ih, b_hh=b_hh, w_out=w_out, b_out=b_out)


# ----------------------------------------------------------------- forward ---
def lm_rnn_forward(tokens, params, proj_dtype=jnp.bfloat16):
    """tokens: (B, T) int32 -> logits (B, V, T) f32 (matches the PyTorch module)."""
    B, T = tokens.shape
    V, _ = params["emb_table"].shape
    H = params["w_hh"].shape[0]

    # vreg-aligned padded sizes (padding is exact: padded columns stay zero).
    Bp = _round_up(B, 8)
    Hp = _round_up(H, 128)
    Vp = _round_up(V, 128)

    # ---- plain-JAX glue (parameter prep, off the sequential chain) ----------
    # x_t @ W_ih + b_ih + b_hh == (emb_table @ W_ih + b_ih + b_hh)[token]
    table_proj = params["emb_table"] @ params["w_ih"] + params["b_ih"] + params["b_hh"]
    table_proj = jnp.pad(table_proj, ((0, 0), (0, Hp - H)))                  # (V, Hp)
    whh_p = jnp.pad(params["w_hh"], ((0, Hp - H), (0, Hp - H)))              # (Hp, Hp) f32
    wout_p = jnp.pad(params["w_out"],
                     ((0, Vp - V), (0, Hp - H))).astype(proj_dtype)          # (Vp, Hp)
    bout_p = jnp.pad(params["b_out"], (0, Vp - V)).reshape(1, Vp)            # (1, Vp) f32

    tokens_p = jnp.pad(tokens, ((0, Bp - B), (0, 0)))                        # pad batches
    # Gather directly into the time-major layout the recurrence consumes.
    # TODO(synk): fold this gather into kernel 1 via scalar-prefetched token ids
    # to skip one HBM round trip of the (T, Bp, Hp) tensor at large sizes.
    xw_tbh = jnp.take(table_proj, tokens_p.T, axis=0)                        # (T, Bp, Hp)

    # ---- kernel 1: T-chunked, pipelined recurrence --------------------------
    tc = _choose_t_chunk(T, Bp, Hp)
    hs_tbh = pl.pallas_call(
        rnn_recurrence_kernel,
        out_shape=jax.ShapeDtypeStruct((T, Bp, Hp), proj_dtype),
        grid=(T // tc,),
        in_specs=[
            pl.BlockSpec((tc, Bp, Hp), lambda c: (c, 0, 0)),   # xw chunk (streamed)
            pl.BlockSpec((Hp, Hp), lambda c: (0, 0)),          # W_hh (fetched once)
        ],
        out_specs=pl.BlockSpec((tc, Bp, Hp), lambda c: (c, 0, 0)),
        scratch_shapes=[
            pltpu.VMEM((Bp, Hp), jnp.float32),                 # h carry across chunks
            pltpu.VMEM((tc, Bp, Hp), jnp.float32),             # per-chunk f32 staging
        ],
        compiler_params=pltpu.CompilerParams(
            dimension_semantics=("arbitrary",),                # sequential dependency
            vmem_limit_bytes=32 * 1024 * 1024),                # explicit, v7x-safe
    )(xw_tbh, whh_p)

    # ---- kernel 2: lane-dense output projection ------------------------------
    tv = _choose_v_tile(Vp, Hp, T, Bp, jnp.dtype(proj_dtype).itemsize)
    out_tbv = pl.pallas_call(
        output_projection_kernel,
        out_shape=jax.ShapeDtypeStruct((T, Bp, Vp), jnp.float32),
        grid=(Vp // tv,),
        in_specs=[
            pl.BlockSpec((T, Bp, Hp), lambda v: (0, 0, 0)),    # hs (fetched once)
            pl.BlockSpec((tv, Hp), lambda v: (v, 0)),          # W_out vocab tile
            pl.BlockSpec((1, tv), lambda v: (0, v)),           # lane-dense bias tile
        ],
        out_specs=pl.BlockSpec((T, Bp, tv), lambda v: (0, 0, v)),
        compiler_params=pltpu.CompilerParams(
            dimension_semantics=("parallel",),                 # feeds both v7x TCs
            vmem_limit_bytes=32 * 1024 * 1024),
    )(hs_tbh, wout_p, bout_p)

    # slice off batch / vocab padding; final .permute(0, 2, 1) done by XLA
    # (T is small, so the lane-dense kernel store + cheap transpose wins).
    return jnp.transpose(out_tbv[:, :B, :V], (1, 2, 0))        # (B, V, T)


# ------------------------------------------------------- pure-JAX reference ---
def lm_rnn_reference(tokens, params):
    emb = jnp.take(params["emb_table"], tokens, axis=0)          # (B, T, E)
    B = tokens.shape[0]
    H = params["w_hh"].shape[0]

    def step(h, x_t):
        h = jnp.tanh(x_t @ params["w_ih"] + params["b_ih"]
                     + h @ params["w_hh"] + params["b_hh"])
        return h, h

    _, hs = lax.scan(step, jnp.zeros((B, H), jnp.float32),
                     jnp.transpose(emb, (1, 0, 2)))              # (T, B, H)
    hs_bth = jnp.transpose(hs, (1, 0, 2))                        # (B, T, H)
    logits = hs_bth @ params["w_out"].T + params["b_out"]        # (B, T, V)
    return jnp.transpose(logits, (0, 2, 1))                      # (B, V, T)


if __name__ == "__main__":
    emb_size, hidden_size, output_size = 32, 32, 64
    B, T = 2, 8

    key = jax.random.PRNGKey(0)
    k_tok, k_par = jax.random.split(key)
    params = init_params(k_par, emb_size, hidden_size, output_size, pad_index=0)

    tokens = jax.random.randint(k_tok, (B, T), 0, output_size, dtype=jnp.int32)
    tokens = tokens.at[:, -1].set(0)          # include the pad token

    ref = lm_rnn_reference(tokens, params)

    # f32 projection path: tight check.
    out_f32 = jax.block_until_ready(
        lm_rnn_forward(tokens, params, proj_dtype=jnp.float32))
    assert out_f32.shape == (B, output_size, T), out_f32.shape
    assert out_f32.dtype == jnp.float32
    err_f32 = float(jnp.max(jnp.abs(out_f32 - ref)))
    assert jnp.allclose(out_f32, ref, atol=5e-4, rtol=5e-4), err_f32

    # default bf16 projection path (review-recommended): loose check.
    out_bf16 = jax.block_until_ready(lm_rnn_forward(tokens, params))
    assert out_bf16.shape == (B, output_size, T), out_bf16.shape
    assert out_bf16.dtype == jnp.float32
    err_bf16 = float(jnp.max(jnp.abs(out_bf16 - ref)))
    assert jnp.allclose(out_bf16, ref, atol=3e-2, rtol=3e-2), err_bf16

    print("KERNEL_OK")
</pallas_src>

<mosaic_0001>
module attributes {stable_mosaic.version = 11 : i64} {
  func.func @rnn_recurrence_kernel(%arg0: i32, %arg1: memref<8x8x128xf32, #tpu.memory_space<vmem>>, %arg2: memref<128x128xf32, #tpu.memory_space<vmem>>, %arg3: memref<8x8x128xf32, #tpu.memory_space<vmem>>, %arg4: memref<8x128xf32, #tpu.memory_space<vmem>>, %arg5: memref<8x8x128xf32, #tpu.memory_space<vmem>>) attributes {dimension_semantics = [#tpu.dimension_semantics<arbitrary>], iteration_bounds = array<i64: 1>, scalar_prefetch = 0 : i64, scratch_operands = 2 : i64, tpu.core_type = #tpu.core_type<tc>, window_params = [{transform_indices = @transform_0, window_bounds = array<i64: 8, 8, 128>}, {pipeline_mode = #tpu.pipeline_mode<synchronous>, transform_indices = @transform_1, window_bounds = array<i64: 128, 128>}, {transform_indices = @transform_2, window_bounds = array<i64: 8, 8, 128>}]} {
    %c0_i32 = arith.constant 0 : i32
    %0 = arith.cmpi eq, %arg0, %c0_i32 : i32
    %1 = arith.extui %0 : i1 to i32
    %c0_i32_0 = arith.constant 0 : i32
    %2 = arith.cmpi ne, %1, %c0_i32_0 : i32
    scf.if %2 {
      %cst_52 = arith.constant 0.000000e+00 : f32
      %88 = vector.broadcast %cst_52 : f32 to vector<8x128xf32>
      %c0_53 = arith.constant 0 : index
      %c0_54 = arith.constant 0 : index
      %89 = vector.load %arg4[%c0_53, %c0_54] : memref<8x128xf32, #tpu.memory_space<vmem>>, vector<8x128xf32>
      tpu.vector_store %arg4[%c0_53, %c0_54], %88 {strides = array<i32>} : memref<8x128xf32, #tpu.memory_space<vmem>>, vector<8x128xf32>,
    } else {
    }
    %c0 = arith.constant 0 : index
    %c0_1 = arith.constant 0 : index
    %3 = vector.load %arg2[%c0, %c0_1] : memref<128x128xf32, #tpu.memory_space<vmem>>, vector<128x128xf32>
    %c0_2 = arith.constant 0 : index
    %c0_3 = arith.constant 0 : index
    %4 = vector.load %arg4[%c0_2, %c0_3] : memref<8x128xf32, #tpu.memory_space<vmem>>, vector<8x128xf32>
    %c0_i32_4 = arith.constant 0 : i32
    %5 = arith.index_cast %c0_i32_4 : i32 to index
    %c0_5 = arith.constant 0 : index
    %c0_6 = arith.constant 0 : index
    %6 = vector.load %arg1[%5, %c0_5, %c0_6] : memref<8x8x128xf32, #tpu.memory_space<vmem>>, vector<1x8x128xf32>
    %7 = vector.shape_cast %6 : vector<1x8x128xf32> to vector<8x128xf32>
    %cst = arith.constant dense<0.000000e+00> : vector<8x128xf32>
    %8 = tpu.matmul %4, %3, %cst {dimension_numbers = #tpu.dot_dimension_numbers<[1], [0], [0], [1], [0, 0, 1, 1], [], []>} : vector<8x128xf32>, vector<128x128xf32>, vector<8x128xf32> -> vector<8x128xf32>
    %9 = arith.addf %7, %8 : vector<8x128xf32>
    %10 = math.tanh %9 : vector<8x128xf32>
    %11 = arith.index_cast %c0_i32_4 : i32 to index
    %c0_7 = arith.constant 0 : index
    %c0_8 = arith.constant 0 : index
    %12 = vector.load %arg5[%11, %c0_7, %c0_8] : memref<8x8x128xf32, #tpu.memory_space<vmem>>, vector<1x8x128xf32>
    %13 = vector.shape_cast %12 : vector<1x8x128xf32> to vector<8x128xf32>
    %14 = vector.shape_cast %10 : vector<8x128xf32> to vector<1x8x128xf32>
    tpu.vector_store %arg5[%11, %c0_7, %c0_8], %14 {strides = array<i32>} : memref<8x8x128xf32, #tpu.memory_space<vmem>>, vector<1x8x128xf32>,
    %c1_i32 = arith.constant 1 : i32
    %15 = arith.index_cast %c1_i32 : i32 to index
    %c0_9 = arith.constant 0 : index
    %c0_10 = arith.constant 0 : index
    %16 = vector.load %arg1[%15, %c0_9, %c0_10] : memref<8x8x128xf32, #tpu.memory_space<vmem>>, vector<1x8x128xf32>
    %17 = vector.shape_cast %16 : vector<1x8x128xf32> to vector<8x128xf32>
    %cst_11 = arith.constant dense<0.000000e+00> : vector<8x128xf32>
    %18 = tpu.matmul %10, %3, %cst_11 {dimension_numbers = #tpu.dot_dimension_numbers<[1], [0], [0], [1], [0, 0, 1, 1], [], []>} : vector<8x128xf32>, vector<128x128xf32>, vector<8x128xf32> -> vector<8x128xf32>
    %19 = arith.addf %17, %18 : vector<8x128xf32>
    %20 = math.tanh %19 : vector<8x128xf32>
    %21 = arith.index_cast %c1_i32 : i32 to index
    %c0_12 = arith.constant 0 : index
    %c0_13 = arith.constant 0 : index
    %22 = vector.load %arg5[%21, %c0_12, %c0_13] : memref<8x8x128xf32, #tpu.memory_space<vmem>>, vector<1x8x128xf32>
    %23 = vector.shape_cast %22 : vector<1x8x128xf32> to vector<8x128xf32>
    %24 = vector.shape_cast %20 : vector<8x128xf32> to vector<1x8x128xf32>
    tpu.vector_store %arg5[%21, %c0_12, %c0_13], %24 {strides = array<i32>} : memref<8x8x128xf32, #tpu.memory_space<vmem>>, vector<1x8x128xf32>,
    %c2_i32 = arith.constant 2 : i32
    %25 = arith.index_cast %c2_i32 : i32 to index
    %c0_14 = arith.constant 0 : index
    %c0_15 = arith.constant 0 : index
    %26 = vector.load %arg1[%25, %c0_14, %c0_15] : memref<8x8x128xf32, #tpu.memory_space<vmem>>, vector<1x8x128xf32>
    %27 = vector.shape_cast %26 : vector<1x8x128xf32> to vector<8x128xf32>
    %cst_16 = arith.constant dense<0.000000e+00> : vector<8x128xf32>
    %28 = tpu.matmul %20, %3, %cst_16 {dimension_numbers = #tpu.dot_dimension_numbers<[1], [0], [0], [1], [0, 0, 1, 1], [], []>} : vector<8x128xf32>, vector<128x128xf32>, vector<8x128xf32> -> vector<8x128xf32>
    %29 = arith.addf %27, %28 : vector<8x128xf32>
    %30 = math.tanh %29 : vector<8x128xf32>
    %31 = arith.index_cast %c2_i32 : i32 to index
    %c0_17 = arith.constant 0 : index
    %c0_18 = arith.constant 0 : index
    %32 = vector.load %arg5[%31, %c0_17, %c0_18] : memref<8x8x128xf32, #tpu.memory_space<vmem>>, vector<1x8x128xf32>
    %33 = vector.shape_cast %32 : vector<1x8x128xf32> to vector<8x128xf32>
    %34 = vector.shape_cast %30 : vector<8x128xf32> to vector<1x8x128xf32>
    tpu.vector_store %arg5[%31, %c0_17, %c0_18], %34 {strides = array<i32>} : memref<8x8x128xf32, #tpu.memory_space<vmem>>, vector<1x8x128xf32>,
    %c3_i32 = arith.constant 3 : i32
    %35 = arith.index_cast %c3_i32 : i32 to index
    %c0_19 = arith.constant 0 : index
    %c0_20 = arith.constant 0 : index
    %36 = vector.load %arg1[%35, %c0_19, %c0_20] : memref<8x8x128xf32, #tpu.memory_space<vmem>>, vector<1x8x128xf32>
    %37 = vector.shape_cast %36 : vector<1x8x128xf32> to vector<8x128xf32>
    %cst_21 = arith.constant dense<0.000000e+00> : vector<8x128xf32>
    %38 = tpu.matmul %30, %3, %cst_21 {dimension_numbers = #tpu.dot_dimension_numbers<[1], [0], [0], [1], [0, 0, 1, 1], [], []>} : vector<8x128xf32>, vector<128x128xf32>, vector<8x128xf32> -> vector<8x128xf32>
    %39 = arith.addf %37, %38 : vector<8x128xf32>
    %40 = math.tanh %39 : vector<8x128xf32>
    %41 = arith.index_cast %c3_i32 : i32 to index
    %c0_22 = arith.constant 0 : index
    %c0_23 = arith.constant 0 : index
    %42 = vector.load %arg5[%41, %c0_22, %c0_23] : memref<8x8x128xf32, #tpu.memory_space<vmem>>, vector<1x8x128xf32>
    %43 = vector.shape_cast %42 : vector<1x8x128xf32> to vector<8x128xf32>
    %44 = vector.shape_cast %40 : vector<8x128xf32> to vector<1x8x128xf32>
    tpu.vector_store %arg5[%41, %c0_22, %c0_23], %44 {strides = array<i32>} : memref<8x8x128xf32, #tpu.memory_space<vmem>>, vector<1x8x128xf32>,
    %c4_i32 = arith.constant 4 : i32
    %45 = arith.index_cast %c4_i32 : i32 to index
    %c0_24 = arith.constant 0 : index
    %c0_25 = arith.constant 0 : index
    %46 = vector.load %arg1[%45, %c0_24, %c0_25] : memref<8x8x128xf32, #tpu.memory_space<vmem>>, vector<1x8x128xf32>
    %47 = vector.shape_cast %46 : vector<1x8x128xf32> to vector<8x128xf32>
    %cst_26 = arith.constant dense<0.000000e+00> : vector<8x128xf32>
    %48 = tpu.matmul %40, %3, %cst_26 {dimension_numbers = #tpu.dot_dimension_numbers<[1], [0], [0], [1], [0, 0, 1, 1], [], []>} : vector<8x128xf32>, vector<128x128xf32>, vector<8x128xf32> -> vector<8x128xf32>
    %49 = arith.addf %47, %48 : vector<8x128xf32>
    %50 = math.tanh %49 : vector<8x128xf32>
    %51 = arith.index_cast %c4_i32 : i32 to index
    %c0_27 = arith.constant 0 : index
    %c0_28 = arith.constant 0 : index
    %52 = vector.load %arg5[%51, %c0_27, %c0_28] : memref<8x8x128xf32, #tpu.memory_space<vmem>>, vector<1x8x128xf32>
    %53 = vector.shape_cast %52 : vector<1x8x128xf32> to vector<8x128xf32>
    %54 = vector.shape_cast %50 : vector<8x128xf32> to vector<1x8x128xf32>
    tpu.vector_store %arg5[%51, %c0_27, %c0_28], %54 {strides = array<i32>} : memref<8x8x128xf32, #tpu.memory_space<vmem>>, vector<1x8x128xf32>,
    %c5_i32 = arith.constant 5 : i32
    %55 = arith.index_cast %c5_i32 : i32 to index
    %c0_29 = arith.constant 0 : index
    %c0_30 = arith.constant 0 : index
    %56 = vector.load %arg1[%55, %c0_29, %c0_30] : memref<8x8x128xf32, #tpu.memory_space<vmem>>, vector<1x8x128xf32>
    %57 = vector.shape_cast %56 : vector<1x8x128xf32> to vector<8x128xf32>
    %cst_31 = arith.constant dense<0.000000e+00> : vector<8x128xf32>
    %58 = tpu.matmul %50, %3, %cst_31 {dimension_numbers = #tpu.dot_dimension_numbers<[1], [0], [0], [1], [0, 0, 1, 1], [], []>} : vector<8x128xf32>, vector<128x128xf32>, vector<8x128xf32> -> vector<8x128xf32>
    %59 = arith.addf %57, %58 : vector<8x128xf32>
    %60 = math.tanh %59 : vector<8x128xf32>
    %61 = arith.index_cast %c5_i32 : i32 to index
    %c0_32 = arith.constant 0 : index
    %c0_33 = arith.constant 0 : index
    %62 = vector.load %arg5[%61, %c0_32, %c0_33] : memref<8x8x128xf32, #tpu.memory_space<vmem>>, vector<1x8x128xf32>
    %63 = vector.shape_cast %62 : vector<1x8x128xf32> to vector<8x128xf32>
    %64 = vector.shape_cast %60 : vector<8x128xf32> to vector<1x8x128xf32>
    tpu.vector_store %arg5[%61, %c0_32, %c0_33], %64 {strides = array<i32>} : memref<8x8x128xf32, #tpu.memory_space<vmem>>, vector<1x8x128xf32>,
    %c6_i32 = arith.constant 6 : i32
    %65 = arith.index_cast %c6_i32 : i32 to index
    %c0_34 = arith.constant 0 : index
    %c0_35 = arith.constant 0 : index
    %66 = vector.load %arg1[%65, %c0_34, %c0_35] : memref<8x8x128xf32, #tpu.memory_space<vmem>>, vector<1x8x128xf32>
    %67 = vector.shape_cast %66 : vector<1x8x128xf32> to vector<8x128xf32>
    %cst_36 = arith.constant dense<0.000000e+00> : vector<8x128xf32>
    %68 = tpu.matmul %60, %3, %cst_36 {dimension_numbers = #tpu.dot_dimension_numbers<[1], [0], [0], [1], [0, 0, 1, 1], [], []>} : vector<8x128xf32>, vector<128x128xf32>, vector<8x128xf32> -> vector<8x128xf32>
    %69 = arith.addf %67, %68 : vector<8x128xf32>
    %70 = math.tanh %69 : vector<8x128xf32>
    %71 = arith.index_cast %c6_i32 : i32 to index
    %c0_37 = arith.constant 0 : index
    %c0_38 = arith.constant 0 : index
    %72 = vector.load %arg5[%71, %c0_37, %c0_38] : memref<8x8x128xf32, #tpu.memory_space<vmem>>, vector<1x8x128xf32>
    %73 = vector.shape_cast %72 : vector<1x8x128xf32> to vector<8x128xf32>
    %74 = vector.shape_cast %70 : vector<8x128xf32> to vector<1x8x128xf32>
    tpu.vector_store %arg5[%71, %c0_37, %c0_38], %74 {strides = array<i32>} : memref<8x8x128xf32, #tpu.memory_space<vmem>>, vector<1x8x128xf32>,
    %c7_i32 = arith.constant 7 : i32
    %75 = arith.index_cast %c7_i32 : i32 to index
    %c0_39 = arith.constant 0 : index
    %c0_40 = arith.constant 0 : index
    %76 = vector.load %arg1[%75, %c0_39, %c0_40] : memref<8x8x128xf32, #tpu.memory_space<vmem>>, vector<1x8x128xf32>
    %77 = vector.shape_cast %76 : vector<1x8x128xf32> to vector<8x128xf32>
    %cst_41 = arith.constant dense<0.000000e+00> : vector<8x128xf32>
    %78 = tpu.matmul %70, %3, %cst_41 {dimension_numbers = #tpu.dot_dimension_numbers<[1], [0], [0], [1], [0, 0, 1, 1], [], []>} : vector<8x128xf32>, vector<128x128xf32>, vector<8x128xf32> -> vector<8x128xf32>
    %79 = arith.addf %77, %78 : vector<8x128xf32>
    %80 = math.tanh %79 : vector<8x128xf32>
    %81 = arith.index_cast %c7_i32 : i32 to index
    %c0_42 = arith.constant 0 : index
    %c0_43 = arith.constant 0 : index
    %82 = vector.load %arg5[%81, %c0_42, %c0_43] : memref<8x8x128xf32, #tpu.memory_space<vmem>>, vector<1x8x128xf32>
    %83 = vector.shape_cast %82 : vector<1x8x128xf32> to vector<8x128xf32>
    %84 = vector.shape_cast %80 : vector<8x128xf32> to vector<1x8x128xf32>
    tpu.vector_store %arg5[%81, %c0_42, %c0_43], %84 {strides = array<i32>} : memref<8x8x128xf32, #tpu.memory_space<vmem>>, vector<1x8x128xf32>,
    %c8_i32 = arith.constant 8 : i32
    %c0_44 = arith.constant 0 : index
    %c0_45 = arith.constant 0 : index
    %85 = vector.load %arg4[%c0_44, %c0_45] : memref<8x128xf32, #tpu.memory_space<vmem>>, vector<8x128xf32>
    tpu.vector_store %arg4[%c0_44, %c0_45], %80 {strides = array<i32>} : memref<8x128xf32, #tpu.memory_space<vmem>>, vector<8x128xf32>,
    %c0_46 = arith.constant 0 : index
    %c0_47 = arith.constant 0 : index
    %c0_48 = arith.constant 0 : index
    %86 = vector.load %arg5[%c0_46, %c0_47, %c0_48] : memref<8x8x128xf32, #tpu.memory_space<vmem>>, vector<8x8x128xf32>
    %c0_49 = arith.constant 0 : index
    %c0_50 = arith.constant 0 : index
    %c0_51 = arith.constant 0 : index
    %87 = vector.load %arg3[%c0_49, %c0_50, %c0_51] : memref<8x8x128xf32, #tpu.memory_space<vmem>>, vector<8x8x128xf32>
    tpu.vector_store %arg3[%c0_49, %c0_50, %c0_51], %86 {strides = array<i32>} : memref<8x8x128xf32, #tpu.memory_space<vmem>>, vector<8x8x128xf32>,
    return
  }
  func.func @transform_0(%arg0: i32) -> (i32, i32, i32) {
    %c0_i32 = arith.constant 0 : i32
    %c0_i32_0 = arith.constant 0 : i32
    %c0_i32_1 = arith.constant 0 : i32
    return %arg0, %c0_i32, %c0_i32_0 : i32, i32, i32
  }
  func.func @transform_1(%arg0: i32) -> (i32, i32) {
    %c0_i32 = arith.constant 0 : i32
    %c0_i32_0 = arith.constant 0 : i32
    %c0_i32_1 = arith.constant 0 : i32
    return %c0_i32, %c0_i32_0 : i32, i32
  }
  func.func @transform_2(%arg0: i32) -> (i32, i32, i32) {
    %c0_i32 = arith.constant 0 : i32
    %c0_i32_0 = arith.constant 0 : i32
    %c0_i32_1 = arith.constant 0 : i32
    return %arg0, %c0_i32, %c0_i32_0 : i32, i32, i32
  }
}

</mosaic_0001>

<bundles_post_ra>
// kernel: tpu_custom_call.1
= control target key start
LH: loop header
LB: loop body
LE: loop exit
PB: predicated region body
PF: predicated region fallthrough
CT: control target
= control target key end

     0   :  { %7 = vsyncpa [#allocation5], 0  ;;  %s1636_s0 = inlined_call_operand.hbm [shape: f32[8,8,128], index: 0, kind: input, shape index: {}]   ;;  %s1637_s1 = inlined_call_operand.hbm [shape: f32[128,128], index: 1, kind: input, shape index: {}]   ;;  %s1638_s2 = inlined_call_operand.hbm [shape: f32[8,8,128], index: 2, kind: output, shape index: {}]  }
   0x1   :  { %8 = vsyncpa [#allocation8], 0 }
   0x2   :  { %9 = vsyncpa [#allocation6], 0  ;;  %s1407_s9 = smov [#allocation4]   ;;  %s1335_s13 = scalar_lea.hbm %s1636_s0, 1024 }
   0x3   :  { %s15_s10 = sshll.u32 %s1407_s9, 4  ;;  %p1336_p0 = scmp.ne.s32.totalorder %s1636_s0, %s1335_s13  ;;  %s16_s10 = int_to_ptr.vmem [resolvable:$true] %s15_s10 }
   0x4   :  { %p1339_p1 = scmp.lt.u32.totalorder %s1335_s13, %s1636_s0 }
   0x6   :  { %p1341_p2 = pnand %p1339_p1, %p1336_p0 }
   0x8   :  { %1344 = shalt.err (!%p1341_p2)
}
   0x9   :  { %s1345_s18 = scalar_lea.vmem %s16_s10, 1024  ;;  %p1350_p4 = scmp.lt.s32.totalorder %s16_s10, %s16_s10 }
   0xa   :  { %p1346_p3 = scmp.ne.s32.totalorder %s16_s10, %s1345_s18  ;;  %p1351_p5 = scmp.lt.s32.totalorder %s1345_s18, %s1345_s18 }
   0xc   :  { %p1352_p6 = por %p1351_p5, %p1350_p4 }
   0xe   :  { %p1353_p7 = pnand %p1352_p6, %p1346_p3 }
  0x10   :  { %1356 = shalt.err (!%p1353_p7)
}
  0x11   :  { %s1408_s19 = smov 128   ;;  %s1409_s20 = smov 8  }
  0x12   :  { %21 = dma.hbm_to_vmem [thread:$0]  %s1636_s0, 1024, %s16_s10, [#allocation5], %s1408_s19, %s1408_s19, %s1409_s20  }
  0x13   :  { %s1410_s23 = smov [#allocation7]   ;;  %s1357_s27 = scalar_lea.hbm %s1637_s1, 2048 }
  0x14   :  { %s27_s24 = sshll.u32 %s1410_s23, 4  ;;  %p1358_p8 = scmp.ne.s32.totalorder %s1637_s1, %s1357_s27  ;;  %s28_s24 = int_to_ptr.vmem [resolvable:$true] %s27_s24 }
  0x15   :  { %p1361_p9 = scmp.lt.u32.totalorder %s1357_s27, %s1637_s1 }
  0x17   :  { %p1363_p10 = pnand %p1361_p9, %p1358_p8 }
  0x19   :  { %1366 = shalt.err (!%p1363_p10)
}
  0x1a   :  { %s1367_s4 = scalar_lea.vmem %s28_s24, 2048  ;;  %p1372_p12 = scmp.lt.s32.totalorder %s28_s24, %s28_s24 }
  0x1b   :  { %p1368_p11 = scmp.ne.s32.totalorder %s28_s24, %s1367_s4  ;;  %p1373_p13 = scmp.lt.s32.totalorder %s1367_s4, %s1367_s4 }
  0x1d   :  { %p1374_p0 = por %p1373_p13, %p1372_p12 }
  0x1f   :  { %p1375_p1 = pnand %p1374_p0, %p1368_p11 }
  0x21   :  { %1378 = shalt.err (!%p1375_p1)
}
  0x22   :  { %33 = dma.hbm_to_vmem [thread:$0]  %s1637_s1, 2048, %s28_s24, [#allocation8], %s1408_s19, %s1408_s19, %s1409_s20  }
  0x23   :  { %1401 = dma.done.wait [#allocation5], 1024  }
  0x24   :  { %1402 = vsyncadd [#allocation5], 4294966272 }
  0x25   :  { %1403 = dma.done.wait [#allocation8], 2048  }
  0x26   :  { %1404 = vsyncadd [#allocation8], 4294965248  ;;  %v1411_v0 = vmov 0.0|0.0   ;;  %vm1412_vm0 = vmmov 0   ;;  %v1413_v1 = vmov 0.0   ;;  %v45_v2 = vld [vmem:[#allocation7] sm:$0xff] }
  0x27   :  { %1119 = vmatprep.subr.bf16.mxu0 %v1411_v0  ;;  %871 = vmatprep.mubr.msk.f32.mxu0 %vm1412_vm0, %v1413_v1  ;;  %v46_v3 = vld [vmem:[#allocation7 + $0x8] sm:$0xff]  ;;  %v47_v4 = vld [vmem:[#allocation7 + $0x10] sm:$0xff]  ;;  %v48_v6 = vld [vmem:[#allocation7 + $0x18] sm:$0xff]  ;;  %s1414_s1 = smov [#allocation9]  }
  0x28   :  { %1143 = vmatprep.subr.bf16.mxu1 %v1411_v0  ;;  %906 = vmatprep.mubr.msk.f32.mxu1 %vm1412_vm0, %v1413_v1  ;;  %v1466_v5 = vpack.c.bf16 %v46_v3, %v45_v2  ;;  %v1469_v7 = vpack.c.bf16 %v48_v6, %v47_v4  ;;  %v49_v8 = vld [vmem:[#allocation7 + $0x20] sm:$0xff]  ;;  %v50_v9 = vld [vmem:[#allocation7 + $0x28] sm:$0xff]  ;;  %v51_v11 = vld [vmem:[#allocation7 + $0x30] sm:$0xff]  ;;  %s690_s6 = sshll.u32 %s1414_s1, 4  ;;  %s691_s6 = int_to_ptr.vmem [resolvable:$true] %s690_s6 }
  0x29   :  { %v1475_v10 = vpack.c.bf16 %v50_v9, %v49_v8  ;;  %v52_v12 = vld [vmem:[#allocation7 + $0x38] sm:$0xff]  ;;  %v53_v14 = vld [vmem:[#allocation7 + $0x40] sm:$0xff]  ;;  %v54_v15 = vld [vmem:[#allocation7 + $0x48] sm:$0xff]  ;;  %s1379_s7 = scalar_lea.vmem %s691_s6, 1024  ;;  %p1384_p3 = scmp.lt.s32.totalorder %s691_s6, %s691_s6 }
  0x2a   :  { %1121 = vmatpush3.bf16.msra.mxu0 %v1466_v5  ;;  %1145 = vmatpush3.bf16.msra.mxu1 %v1466_v5  ;;  %v1481_v13 = vpack.c.bf16 %v52_v12, %v51_v11  ;;  %v1487_v16 = vpack.c.bf16 %v54_v15, %v53_v14  ;;  %v55_v17 = vld [vmem:[#allocation7 + $0x50] sm:$0xff]  ;;  %v56_v18 = vld [vmem:[#allocation7 + $0x58] sm:$0xff]  ;;  %v57_v20 = vld [vmem:[#allocation7 + $0x60] sm:$0xff]  ;;  %p1380_p2 = scmp.ne.s32.totalorder %s691_s6, %s1379_s7  ;;  %p1385_p4 = scmp.lt.s32.totalorder %s1379_s7, %s1379_s7 }
  0x2b   :  { %1122 = vmatprep.subr.bf16.mxu0 %v1411_v0  ;;  %1146 = vmatprep.subr.bf16.mxu1 %v1411_v0  ;;  %v1493_v19 = vpack.c.bf16 %v56_v18, %v55_v17  ;;  %v58_v21 = vld [vmem:[#allocation7 + $0x68] sm:$0xff]  ;;  %v59_v23 = vld [vmem:[#allocation7 + $0x70] sm:$0xff]  ;;  %v60_v24 = vld [vmem:[#allocation7 + $0x78] sm:$0xff] }
  0x2c   :  { %v1499_v22 = vpack.c.bf16 %v58_v21, %v57_v20  ;;  %v1505_v25 = vpack.c.bf16 %v60_v24, %v59_v23  ;;  %v62_v26 = vld [vmem:[#allocation4] sm:$0xff]  ;;  %v137_v31 = vld [vmem:[#allocation4 + $0x8] sm:$0xff]  ;;  %v213_v36 = vld [vmem:[#allocation4 + $0x10] sm:$0xff]  ;;  %p1386_p5 = por %p1385_p4, %p1384_p3 }
  0x2d   :  { %v289_v41 = vld [vmem:[#allocation4 + $0x18] sm:$0xff]  ;;  %v365_v46 = vld [vmem:[#allocation4 + $0x20] sm:$0xff]  ;;  %v441_v51 = vld [vmem:[#allocation4 + $0x28] sm:$0xff] }
  0x2e   :  { %1124 = vmatpush3.bf16.msra.mxu0 %v1469_v7  ;;  %1148 = vmatpush3.bf16.msra.mxu1 %v1469_v7  ;;  %v517_v56 = vld [vmem:[#allocation4 + $0x30] sm:$0xff]  ;;  %v593_v61 = vld [vmem:[#allocation4 + $0x38] sm:$0xff]  ;;  %p1387_p6 = pnand %p1386_p5, %p1380_p2 }
  0x2f   :  { %1125 = vmatprep.subr.bf16.mxu0 %v1411_v0  ;;  %1149 = vmatprep.subr.bf16.mxu1 %v1411_v0 }
  0x32   :  { %1127 = vmatpush3.bf16.msra.mxu0 %v1475_v10  ;;  %1151 = vmatpush3.bf16.msra.mxu1 %v1475_v10 }
  0x33   :  { %1128 = vmatprep.subr.bf16.mxu0 %v1411_v0  ;;  %1152 = vmatprep.subr.bf16.mxu1 %v1411_v0 }
  0x36   :  { %1130 = vmatpush3.bf16.msra.mxu0 %v1481_v13  ;;  %1154 = vmatpush3.bf16.msra.mxu1 %v1481_v13 }
  0x37   :  { %1131 = vmatprep.subr.bf16.mxu0 %v1411_v0  ;;  %1155 = vmatprep.subr.bf16.mxu1 %v1411_v0 }
  0x3a   :  { %1133 = vmatpush3.bf16.msra.mxu0 %v1487_v16  ;;  %1157 = vmatpush3.bf16.msra.mxu1 %v1487_v16 }
  0x3b   :  { %1134 = vmatprep.subr.bf16.mxu0 %v1411_v0  ;;  %1158 = vmatprep.subr.bf16.mxu1 %v1411_v0 }
  0x3e   :  { %1136 = vmatpush3.bf16.msra.mxu0 %v1493_v19  ;;  %1160 = vmatpush3.bf16.msra.mxu1 %v1493_v19 }
  0x3f   :  { %1137 = vmatprep.subr.bf16.mxu0 %v1411_v0  ;;  %1161 = vmatprep.subr.bf16.mxu1 %v1411_v0 }
  0x42   :  { %1139 = vmatpush3.bf16.msra.mxu0 %v1499_v22  ;;  %1163 = vmatpush3.bf16.msra.mxu1 %v1499_v22 }
  0x43   :  { %1140 = vmatprep.subr.bf16.mxu0 %v1411_v0  ;;  %1164 = vmatprep.subr.bf16.mxu1 %v1411_v0 }
  0x46   :  { %1142 = vmatpush3.bf16.msra.mxu0 %v1505_v25  ;;  %1166 = vmatpush3.bf16.msra.mxu1 %v1505_v25 }
  0x47   :  { %1167 = vmatprep.subr.bf16.mxu0 %v1411_v0  ;;  %1191 = vmatprep.subr.bf16.mxu1 %v1411_v0 }
  0x49   :  { %872 = vmatmul.mubr.f32.vlgmr.msra.gmra.mrb[0].mxu0 %v1413_v1 }
  0x4a   :  { %1169 = vmatpush3.bf16.msra.mxu0 %v1466_v5  ;;  %941 = vmatprep.mubr.msk.f32.mxu0 %vm1412_vm0, %v1413_v1 }
  0x4b   :  { %1170 = vmatprep.subr.bf16.mxu0 %v1411_v0 }
  0x4e   :  { %1172 = vmatpush3.bf16.msra.mxu0 %v1469_v7 }
  0x4f   :  { %1173 = vmatprep.subr.bf16.mxu0 %v1411_v0 }
  0x52   :  { %1175 = vmatpush3.bf16.msra.mxu0 %v1475_v10 }
  0x53   :  { %1176 = vmatprep.subr.bf16.mxu0 %v1411_v0 }
  0x56   :  { %1178 = vmatpush3.bf16.msra.mxu0 %v1481_v13 }
  0x57   :  { %1179 = vmatprep.subr.bf16.mxu0 %v1411_v0 }
  0x5a   :  { %1181 = vmatpush3.bf16.msra.mxu0 %v1487_v16 }
  0x5b   :  { %1182 = vmatprep.subr.bf16.mxu0 %v1411_v0 }
  0x5e   :  { %1184 = vmatpush3.bf16.msra.mxu0 %v1493_v19 }
  0x5f   :  { %1185 = vmatprep.subr.bf16.mxu0 %v1411_v0 }
  0x62   :  { %1187 = vmatpush3.bf16.msra.mxu0 %v1499_v22 }
  0x63   :  { %1188 = vmatprep.subr.bf16.mxu0 %v1411_v0 }
  0x66   :  { %1190 = vmatpush3.bf16.msra.mxu0 %v1505_v25 }
  0x67   :  { %1215 = vmatprep.subr.bf16.mxu0 %v1411_v0 }
 0x11c   :  { %v129_v27 = vpop.f32.mrb[0].mxu0 }
 0x11d   :  { %v133_v28 = vadd.f32 %v129_v27, %v62_v26  ;;  %v873_v29 = vpop.f32.mrb[1].mxu0 }
 0x11f   :  { %1319 = vtanh.f32 %v133_v28 }
 0x129   :  { %v1320_v30 = vpop.eup %1319 }
 0x12a   :  { %677 = vst [vmem:[#allocation9] sm:$0xff] %v1320_v30  ;;  %907 = vmatmul.mubr.f32.vlgmr.msra.gmra.mrb[0].mxu1 %v1320_v30 }
 0x12b   :  { %1193 = vmatpush3.bf16.msra.mxu1 %v1466_v5  ;;  %976 = vmatprep.mubr.msk.f32.mxu1 %vm1412_vm0, %v1413_v1 }
 0x12c   :  { %1194 = vmatprep.subr.bf16.mxu1 %v1411_v0 }
 0x12f   :  { %1196 = vmatpush3.bf16.msra.mxu1 %v1469_v7 }
 0x130   :  { %1197 = vmatprep.subr.bf16.mxu1 %v1411_v0 }
 0x133   :  { %1199 = vmatpush3.bf16.msra.mxu1 %v1475_v10 }
 0x134   :  { %1200 = vmatprep.subr.bf16.mxu1 %v1411_v0 }
 0x137   :  { %1202 = vmatpush3.bf16.msra.mxu1 %v1481_v13 }
 0x138   :  { %1203 = vmatprep.subr.bf16.mxu1 %v1411_v0 }
 0x13b   :  { %1205 = vmatpush3.bf16.msra.mxu1 %v1487_v16 }
 0x13c   :  { %1206 = vmatprep.subr.bf16.mxu1 %v1411_v0 }
 0x13f   :  { %1208 = vmatpush3.bf16.msra.mxu1 %v1493_v19 }
 0x140   :  { %1209 = vmatprep.subr.bf16.mxu1 %v1411_v0 }
 0x143   :  { %1211 = vmatpush3.bf16.msra.mxu1 %v1499_v22 }
 0x144   :  { %1212 = vmatprep.subr.bf16.mxu1 %v1411_v0 }
 0x147   :  { %1214 = vmatpush3.bf16.msra.mxu1 %v1505_v25 }
 0x148   :  { %1239 = vmatprep.subr.bf16.mxu1 %v1411_v0 }
 0x1fd   :  { %v204_v32 = vpop.f32.mrb[0].mxu1 }
 0x1fe   :  { %v208_v33 = vadd.f32 %v204_v32, %v137_v31  ;;  %v908_v34 = vpop.f32.mrb[1].mxu1 }
 0x200   :  { %1321 = vtanh.f32 %v208_v33 }
 0x20a   :  { %v1322_v35 = vpop.eup %1321 }
 0x20b   :  { %678 = vst [vmem:[#allocation9 + $0x8] sm:$0xff] %v1322_v35  ;;  %942 = vmatmul.mubr.f32.vlgmr.msra.gmra.mrb[2].mxu0 %v1322_v35 }
 0x20c   :  { %1217 = vmatpush3.bf16.msra.mxu0 %v1466_v5  ;;  %1011 = vmatprep.mubr.msk.f32.mxu0 %vm1412_vm0, %v1413_v1 }
 0x20d   :  { %1218 = vmatprep.subr.bf16.mxu0 %v1411_v0 }
 0x210   :  { %1220 = vmatpush3.bf16.msra.mxu0 %v1469_v7 }
 0x211   :  { %1221 = vmatprep.subr.bf16.mxu0 %v1411_v0 }
 0x214   :  { %1223 = vmatpush3.bf16.msra.mxu0 %v1475_v10 }
 0x215   :  { %1224 = vmatprep.subr.bf16.mxu0 %v1411_v0 }
 0x218   :  { %1226 = vmatpush3.bf16.msra.mxu0 %v1481_v13 }
 0x219   :  { %1227 = vmatprep.subr.bf16.mxu0 %v1411_v0 }
 0x21c   :  { %1229 = vmatpush3.bf16.msra.mxu0 %v1487_v16 }
 0x21d   :  { %1230 = vmatprep.subr.bf16.mxu0 %v1411_v0 }
 0x220   :  { %1232 = vmatpush3.bf16.msra.mxu0 %v1493_v19 }
 0x221   :  { %1233 = vmatprep.subr.bf16.mxu0 %v1411_v0 }
 0x224   :  { %1235 = vmatpush3.bf16.msra.mxu0 %v1499_v22 }
 0x225   :  { %1236 = vmatprep.subr.bf16.mxu0 %v1411_v0 }
 0x228   :  { %1238 = vmatpush3.bf16.msra.mxu0 %v1505_v25 }
 0x229   :  { %1263 = vmatprep.subr.bf16.mxu0 %v1411_v0 }
 0x2de   :  { %v280_v37 = vpop.f32.mrb[2].mxu0 }
 0x2df   :  { %v284_v38 = vadd.f32 %v280_v37, %v213_v36  ;;  %v943_v39 = vpop.f32.mrb[3].mxu0 }
 0x2e1   :  { %1323 = vtanh.f32 %v284_v38 }
 0x2eb   :  { %v1324_v40 = vpop.eup %1323 }
 0x2ec   :  { %679 = vst [vmem:[#allocation9 + $0x10] sm:$0xff] %v1324_v40  ;;  %977 = vmatmul.mubr.f32.vlgmr.msra.gmra.mrb[2].mxu1 %v1324_v40 }
 0x2ed   :  { %1241 = vmatpush3.bf16.msra.mxu1 %v1466_v5  ;;  %1046 = vmatprep.mubr.msk.f32.mxu1 %vm1412_vm0, %v1413_v1 }
 0x2ee   :  { %1242 = vmatprep.subr.bf16.mxu1 %v1411_v0 }
 0x2f1   :  { %1244 = vmatpush3.bf16.msra.mxu1 %v1469_v7 }
 0x2f2   :  { %1245 = vmatprep.subr.bf16.mxu1 %v1411_v0 }
 0x2f5   :  { %1247 = vmatpush3.bf16.msra.mxu1 %v1475_v10 }
 0x2f6   :  { %1248 = vmatprep.subr.bf16.mxu1 %v1411_v0 }
 0x2f9   :  { %1250 = vmatpush3.bf16.msra.mxu1 %v1481_v13 }
 0x2fa   :  { %1251 = vmatprep.subr.bf16.mxu1 %v1411_v0 }
 0x2fd   :  { %1253 = vmatpush3.bf16.msra.mxu1 %v1487_v16 }
 0x2fe   :  { %1254 = vmatprep.subr.bf16.mxu1 %v1411_v0 }
 0x301   :  { %1256 = vmatpush3.bf16.msra.mxu1 %v1493_v19 }
 0x302   :  { %1257 = vmatprep.subr.bf16.mxu1 %v1411_v0 }
 0x305   :  { %1259 = vmatpush3.bf16.msra.mxu1 %v1499_v22 }
 0x306   :  { %1260 = vmatprep.subr.bf16.mxu1 %v1411_v0 }
 0x309   :  { %1262 = vmatpush3.bf16.msra.mxu1 %v1505_v25 }
 0x30a   :  { %1287 = vmatprep.subr.bf16.mxu1 %v1411_v0 }
 0x3bf   :  { %v356_v42 = vpop.f32.mrb[2].mxu1 }
 0x3c0   :  { %v360_v43 = vadd.f32 %v356_v42, %v289_v41  ;;  %v978_v44 = vpop.f32.mrb[3].mxu1 }
 0x3c2   :  { %1325 = vtanh.f32 %v360_v43 }
 0x3cc   :  { %v1326_v45 = vpop.eup %1325 }
 0x3cd   :  { %680 = vst [vmem:[#allocation9 + $0x18] sm:$0xff] %v1326_v45  ;;  %1012 = vmatmul.mubr.f32.vlgmr.msra.gmra.mrb[4].mxu0 %v1326_v45 }
 0x3ce   :  { %1265 = vmatpush3.bf16.msra.mxu0 %v1466_v5  ;;  %1081 = vmatprep.mubr.msk.f32.mxu0 %vm1412_vm0, %v1413_v1 }
 0x3cf   :  { %1266 = vmatprep.subr.bf16.mxu0 %v1411_v0 }
 0x3d2   :  { %1268 = vmatpush3.bf16.msra.mxu0 %v1469_v7 }
 0x3d3   :  { %1269 = vmatprep.subr.bf16.mxu0 %v1411_v0 }
 0x3d6   :  { %1271 = vmatpush3.bf16.msra.mxu0 %v1475_v10 }
 0x3d7   :  { %1272 = vmatprep.subr.bf16.mxu0 %v1411_v0 }
 0x3da   :  { %1274 = vmatpush3.bf16.msra.mxu0 %v1481_v13 }
 0x3db   :  { %1275 = vmatprep.subr.bf16.mxu0 %v1411_v0 }
 0x3de   :  { %1277 = vmatpush3.bf16.msra.mxu0 %v1487_v16 }
 0x3df   :  { %1278 = vmatprep.subr.bf16.mxu0 %v1411_v0 }
 0x3e2   :  { %1280 = vmatpush3.bf16.msra.mxu0 %v1493_v19 }
 0x3e3   :  { %1281 = vmatprep.subr.bf16.mxu0 %v1411_v0 }
 0x3e6   :  { %1283 = vmatpush3.bf16.msra.mxu0 %v1499_v22 }
 0x3e7   :  { %1284 = vmatprep.subr.bf16.mxu0 %v1411_v0 }
 0x3ea   :  { %1286 = vmatpush3.bf16.msra.mxu0 %v1505_v25 }
 0x4a0   :  { %v432_v47 = vpop.f32.mrb[4].mxu0 }
 0x4a1   :  { %v436_v48 = vadd.f32 %v432_v47, %v365_v46  ;;  %v1013_v49 = vpop.f32.mrb[5].mxu0 }
 0x4a3   :  { %1327 = vtanh.f32 %v436_v48 }
 0x4ad   :  { %v1328_v50 = vpop.eup %1327 }
 0x4ae   :  { %681 = vst [vmem:[#allocation9 + $0x20] sm:$0xff] %v1328_v50  ;;  %1047 = vmatmul.mubr.f32.vlgmr.msra.gmra.mrb[4].mxu1 %v1328_v50 }
 0x4af   :  { %1289 = vmatpush3.bf16.msra.mxu1 %v1466_v5  ;;  %1116 = vmatprep.mubr.msk.f32.mxu1 %vm1412_vm0, %v1413_v1 }
 0x4b0   :  { %1290 = vmatprep.subr.bf16.mxu1 %v1411_v0 }
 0x4b3   :  { %1292 = vmatpush3.bf16.msra.mxu1 %v1469_v7 }
 0x4b4   :  { %1293 = vmatprep.subr.bf16.mxu1 %v1411_v0 }
 0x4b7   :  { %1295 = vmatpush3.bf16.msra.mxu1 %v1475_v10 }
 0x4b8   :  { %1296 = vmatprep.subr.bf16.mxu1 %v1411_v0 }
 0x4bb   :  { %1298 = vmatpush3.bf16.msra.mxu1 %v1481_v13 }
 0x4bc   :  { %1299 = vmatprep.subr.bf16.mxu1 %v1411_v0 }
 0x4bf   :  { %1301 = vmatpush3.bf16.msra.mxu1 %v1487_v16 }
 0x4c0   :  { %1302 = vmatprep.subr.bf16.mxu1 %v1411_v0 }
 0x4c3   :  { %1304 = vmatpush3.bf16.msra.mxu1 %v1493_v19 }
 0x4c4   :  { %1305 = vmatprep.subr.bf16.mxu1 %v1411_v0 }
 0x4c7   :  { %1307 = vmatpush3.bf16.msra.mxu1 %v1499_v22 }
 0x4c8   :  { %1308 = vmatprep.subr.bf16.mxu1 %v1411_v0 }
 0x4cb   :  { %1310 = vmatpush3.bf16.msra.mxu1 %v1505_v25 }
 0x581   :  { %v508_v52 = vpop.f32.mrb[4].mxu1 }
 0x582   :  { %v512_v53 = vadd.f32 %v508_v52, %v441_v51  ;;  %v1048_v54 = vpop.f32.mrb[5].mxu1 }
 0x584   :  { %1329 = vtanh.f32 %v512_v53 }
 0x58e   :  { %v1330_v55 = vpop.eup %1329 }
 0x58f   :  { %682 = vst [vmem:[#allocation9 + $0x28] sm:$0xff] %v1330_v55  ;;  %1082 = vmatmul.mubr.f32.vlgmr.msra.gmra.mrb[6].mxu0 %v1330_v55 }
 0x662   :  { %v584_v57 = vpop.f32.mrb[6].mxu0 }
 0x663   :  { %v588_v58 = vadd.f32 %v584_v57, %v517_v56  ;;  %v1083_v59 = vpop.f32.mrb[7].mxu0 }
 0x665   :  { %1331 = vtanh.f32 %v588_v58 }
 0x66f   :  { %v1332_v60 = vpop.eup %1331 }
 0x670   :  { %683 = vst [vmem:[#allocation9 + $0x30] sm:$0xff] %v1332_v60  ;;  %1117 = vmatmul.mubr.f32.vlgmr.msra.gmra.mrb[6].mxu1 %v1332_v60 }
 0x743   :  { %v660_v62 = vpop.f32.mrb[6].mxu1 }
 0x744   :  { %v664_v63 = vadd.f32 %v660_v62, %v593_v61  ;;  %v1118_v0 = vpop.f32.mrb[7].mxu1 }
 0x746   :  { %1333 = vtanh.f32 %v664_v63 }
 0x750   :  { %v1334_v1 = vpop.eup %1333 }
 0x751   :  { %684 = vst [vmem:[#allocation9 + $0x38] sm:$0xff] %v1334_v1 }
 0x752   :  { %1390 = shalt.err (!%p1387_p6)
}
 0x753   :  { %s1391_s10 = scalar_lea.hbm %s1638_s2, 1024 }
 0x754   :  { %p1392_p7 = scmp.ne.s32.totalorder %s1638_s2, %s1391_s10  ;;  %p1395_p8 = scmp.lt.u32.totalorder %s1391_s10, %s1638_s2 }
 0x756   :  { %p1397_p9 = pnand %p1395_p8, %p1392_p7 }
 0x758   :  { %1400 = shalt.err (!%p1397_p9)
}
 0x759   :  { %696 = dma.vmem_to_hbm [thread:$0]  %s691_s6, 1024, %s1638_s2, [#allocation6], %s1408_s19, %s1408_s19, %s1409_s20  }
 0x75a   :  { %1405 = dma.done.wait [#allocation6], 1024  }
 0x75b   :  { %1406 = vsyncadd [#allocation6], 4294966272 }
 0x75c   :  { %700 = vsyncpa [#allocation5], 1 }
 0x75d   :  { %701 = vsyncpa [#allocation8], 1 }
 0x75e   :  { %702 = vsyncpa [#allocation6], 1 }

</bundles_post_ra>
